<compile_context>
chip_gen: v7x
topology: tpu7x:2x2x1
jax: 0.10.0
libtpu: 0.0.40
codegen_flags: <defaults>
</compile_context>

<pallas_src>
import functools
import math

import jax
import jax.numpy as jnp
from jax.experimental import pallas as pl
from jax.experimental.pallas import tpu as pltpu

_LANE = 128
_MIB = 1024 * 1024


def _make_concat_kernel(num_inputs, col_block_starts, col_block_counts):
    """At grid point (b, j) exactly one input owns output column-block j; copy it."""

    def kernel(*refs):
        in_refs = refs[:num_inputs]
        o_ref = refs[num_inputs]
        j = pl.program_id(1)
        for i in range(num_inputs):
            start = col_block_starts[i]
            count = col_block_counts[i]

            @pl.when((j >= start) & (j < start + count))
            def _(r=in_refs[i]):
                o_ref[...] = r[...]

    return kernel


def _make_in_index_map(start, count):
    """Clamp to this input's own column-block range so the block index stays
    constant (no re-DMA) on grid steps where this input is not used."""

    def index_map(b, j):
        jj = jnp.minimum(jnp.maximum(j - start, 0), count - 1)
        return (b, jj)

    return index_map


def _pick_col_tile(g, cap):
    """Largest ct with: ct | g, ct % 128 == 0, ct <= cap.  Requires g % 128 == 0."""
    g128 = g // _LANE
    d_max = max(1, min(g128, cap // _LANE))
    for d in range(d_max, 0, -1):
        if g128 % d == 0:
            return _LANE * d
    return _LANE


def concat_channels_pallas(xs):
    """Concatenate NCHW arrays along dim=1 (channels) with a Pallas copy kernel.

    Each input is viewed as a lane-dense (N, C_i*H*W) 2-D array; the output is
    (N, sum_i C_i*H*W) and is tiled over (batch rows, column tiles).
    """
    xs = list(xs)
    assert len(xs) >= 1
    if len(xs) == 1:
        return xs[0]

    n, _, h, w = xs[0].shape
    dtype = xs[0].dtype
    for x in xs:
        assert x.ndim == 4
        assert x.shape[0] == n and x.shape[2] == h and x.shape[3] == w
        assert x.dtype == dtype  # mixed dtypes handled by the Concat wrapper

    m = len(xs)
    hw = h * w
    channel_sizes = [int(x.shape[1]) for x in xs]
    col_sizes = [c * hw for c in channel_sizes]
    k_total = sum(col_sizes)
    c_total = sum(channel_sizes)
    itemsize = jnp.dtype(dtype).itemsize

    g = functools.reduce(math.gcd, col_sizes)
    if g % _LANE != 0:
        # Lane-misaligned column blocks would lower to masked vst.msk / XLU
        # shuffles; XLA's native concat is the better choice there.
        return jnp.concatenate(xs, axis=1)

    # Lane-dense 2-D views (contiguous reshapes, no data movement).
    xs2d = [x.reshape(n, k) for x, k in zip(xs, col_sizes)]

    # VMEM budget: (m inputs + 1 output) blocks, each double-buffered, kept
    # under ~12 MiB total -> safe on v5e's 16 MiB scoped default and far inside
    # v7x's 64 MiB physical VMEM, while blocks stay big enough to amortize the
    # ~0.35 us per-grid-step overhead.
    block_target = max(64 * 1024, min(2 * _MIB, (12 * _MIB) // (2 * (m + 1))))

    # Packed sublane count (8 f32 / 16 bf16 / 32 int8) for batch-tile rounding.
    sublane = 8 * max(1, 4 // itemsize)

    # --- batch tile ---------------------------------------------------------
    if n * _LANE * itemsize <= block_target:
        tb = n  # full batch extent fits even at the minimum column width
    else:
        tb = max(sublane, (block_target // (_LANE * itemsize)) // sublane * sublane)
        if tb >= n:
            tb = n
        else:
            # Prefer a tile that divides n so the last grid step is full-width
            # (no masked partial stores / padded DMA on the final step).
            for cand in range(tb, sublane - 1, -sublane):
                if n % cand == 0:
                    tb = cand
                    break
    n_batch_tiles = pl.cdiv(n, tb)

    # --- column tile --------------------------------------------------------
    # ct divides every input width (so offsets land on block boundaries), is a
    # multiple of 128 lanes, fits the VMEM budget, and leaves >= 4 column steps
    # so the pipeline always has work in flight (and v7x can split the grid
    # across both TensorCores even when the batch grid collapses to 1).
    cap = max(_LANE, min(block_target // max(1, tb * itemsize),
                         max(_LANE, k_total // 4)))
    ct = _pick_col_tile(g, cap)
    n_col_tiles = k_total // ct

    col_block_starts = []
    col_block_counts = []
    off = 0
    for k in col_sizes:
        col_block_starts.append(off // ct)   # exact: ct | every prefix sum
        col_block_counts.append(k // ct)
        off += k

    kernel = _make_concat_kernel(m, col_block_starts, col_block_counts)

    in_specs = [
        pl.BlockSpec((tb, ct), _make_in_index_map(s, c))
        for s, c in zip(col_block_starts, col_block_counts)
    ]
    out_spec = pl.BlockSpec((tb, ct), lambda b, j: (b, j))

    block_bytes = tb * ct * itemsize
    # Explicit, portable VMEM limit: double-buffered blocks + headroom.
    vmem_limit = int(min(2 * (m + 1) * block_bytes + 8 * _MIB, 64 * _MIB))

    out2d = pl.pallas_call(
        kernel,
        out_shape=jax.ShapeDtypeStruct((n, k_total), dtype),
        grid_spec=pltpu.PrefetchScalarGridSpec(
            num_scalar_prefetch=0,
            grid=(n_batch_tiles, n_col_tiles),
            in_specs=in_specs,
            out_specs=out_spec,
        ),
        compiler_params=pltpu.CompilerParams(
            dimension_semantics=("parallel", "parallel"),
            vmem_limit_bytes=vmem_limit,
        ),
    )(*xs2d)

    return out2d.reshape(n, c_total, h, w)


class Concat:
    """JAX/Pallas equivalent of the PyTorch Concat module.

    dim=1 on same-dtype, lane-friendly 4-D inputs above a size threshold goes
    through the Pallas kernel; everything else uses jnp.concatenate (which also
    handles torch.cat-style dtype promotion).
    """

    _MIN_PALLAS_BYTES = 1 * _MIB  # below this, pallas_call overhead dominates

    def __init__(self, dimension=1):
        self.d = dimension

    def __call__(self, x):
        xs = list(x)
        if (
            self.d == 1
            and len(xs) >= 2
            and all(xi.ndim == 4 for xi in xs)
            and len({xi.dtype for xi in xs}) == 1
            and all(
                xi.shape[0] == xs[0].shape[0] and xi.shape[2:] == xs[0].shape[2:]
                for xi in xs
            )
        ):
            total_bytes = sum(int(xi.size) * jnp.dtype(xi.dtype).itemsize for xi in xs)
            hw = int(xs[0].shape[2]) * int(xs[0].shape[3])
            g = functools.reduce(math.gcd, [int(xi.shape[1]) * hw for xi in xs])
            if total_bytes >= self._MIN_PALLAS_BYTES and g % _LANE == 0:
                return concat_channels_pallas(xs)
        # TODO(synk): standalone concat is pure data movement; the real Pallas
        # win is fusing this copy into the consumer kernel. Tiny / unaligned /
        # non-channel concats use XLA's native (bandwidth-optimal) concat.
        return jnp.concatenate(xs, axis=self.d)


if __name__ == "__main__":
    key = jax.random.PRNGKey(0)
    k1, k2, k3, k4, k5 = jax.random.split(key, 5)

    # Small NCHW inputs consistent with the module: batch=2, channels 4/6/4, 16x16.
    x1 = jax.random.normal(k1, (2, 4, 16, 16), dtype=jnp.float32)
    x2 = jax.random.normal(k2, (2, 6, 16, 16), dtype=jnp.float32)
    x3 = jax.random.normal(k3, (2, 4, 16, 16), dtype=jnp.float32)

    # 1) Exercise the Pallas kernel directly (small inputs would otherwise take
    #    the jnp fallback inside Concat). Grid here is (1, 7): 7 column steps.
    out = concat_channels_pallas([x1, x2, x3])
    out = jax.block_until_ready(out)
    ref = jnp.concatenate([x1, x2, x3], axis=1)
    assert out.shape == (2, 14, 16, 16), out.shape
    assert out.dtype == ref.dtype
    assert bool(jnp.array_equal(out, ref)), "Pallas concat mismatch (3 inputs)"

    # 2) Odd batch + two inputs (exercises tb == n with n not a multiple of 8).
    y1 = jax.random.normal(k4, (3, 3, 16, 16), dtype=jnp.float32)
    y2 = jax.random.normal(k5, (3, 5, 16, 16), dtype=jnp.float32)
    out2 = jax.block_until_ready(concat_channels_pallas([y1, y2]))
    ref2 = jnp.concatenate([y1, y2], axis=1)
    assert out2.shape == (3, 8, 16, 16), out2.shape
    assert bool(jnp.array_equal(out2, ref2)), "Pallas concat mismatch (2 inputs)"

    # 3) Module-level API (tiny inputs route to the jnp fallback by design).
    model = Concat(dimension=1)
    out3 = jax.block_until_ready(model([x1, x2, x3]))
    assert bool(jnp.array_equal(out3, ref)), "Concat module mismatch"

    print("KERNEL_OK")
</pallas_src>

<mosaic_0001>
module attributes {stable_mosaic.version = 11 : i64} {
  func.func @kernel(%arg0: i32, %arg1: i32, %arg2: memref<2x512xf32, #tpu.memory_space<vmem>>, %arg3: memref<2x512xf32, #tpu.memory_space<vmem>>, %arg4: memref<2x512xf32, #tpu.memory_space<vmem>>, %arg5: memref<2x512xf32, #tpu.memory_space<vmem>>) attributes {dimension_semantics = [#tpu.dimension_semantics<parallel>, #tpu.dimension_semantics<parallel>], iteration_bounds = array<i64: 1, 7>, scalar_prefetch = 0 : i64, scratch_operands = 0 : i64, tpu.core_type = #tpu.core_type<tc>, window_params = [{transform_indices = @transform_0, window_bounds = array<i64: 2, 512>}, {transform_indices = @transform_1, window_bounds = array<i64: 2, 512>}, {transform_indices = @transform_2, window_bounds = array<i64: 2, 512>}, {transform_indices = @transform_3, window_bounds = array<i64: 2, 512>}]} {
    %c0_i32 = arith.constant 0 : i32
    %0 = arith.cmpi sge, %arg1, %c0_i32 : i32
    %c2_i32 = arith.constant 2 : i32
    %1 = arith.cmpi slt, %arg1, %c2_i32 : i32
    %2 = arith.andi %0, %1 : i1
    %3 = arith.extui %2 : i1 to i32
    %c0_i32_0 = arith.constant 0 : i32
    %4 = arith.cmpi ne, %3, %c0_i32_0 : i32
    scf.if %4 {
      %c0 = arith.constant 0 : index
      %c0_5 = arith.constant 0 : index
      %15 = vector.load %arg2[%c0, %c0_5] : memref<2x512xf32, #tpu.memory_space<vmem>>, vector<2x512xf32>
      %c0_6 = arith.constant 0 : index
      %c0_7 = arith.constant 0 : index
      %16 = vector.load %arg5[%c0_6, %c0_7] : memref<2x512xf32, #tpu.memory_space<vmem>>, vector<2x512xf32>
      tpu.vector_store %arg5[%c0_6, %c0_7], %15 {strides = array<i32>} : memref<2x512xf32, #tpu.memory_space<vmem>>, vector<2x512xf32>,
    } else {
    }
    %c2_i32_1 = arith.constant 2 : i32
    %5 = arith.cmpi sge, %arg1, %c2_i32_1 : i32
    %c5_i32 = arith.constant 5 : i32
    %6 = arith.cmpi slt, %arg1, %c5_i32 : i32
    %7 = arith.andi %5, %6 : i1
    %8 = arith.extui %7 : i1 to i32
    %c0_i32_2 = arith.constant 0 : i32
    %9 = arith.cmpi ne, %8, %c0_i32_2 : i32
    scf.if %9 {
      %c0 = arith.constant 0 : index
      %c0_5 = arith.constant 0 : index
      %15 = vector.load %arg3[%c0, %c0_5] : memref<2x512xf32, #tpu.memory_space<vmem>>, vector<2x512xf32>
      %c0_6 = arith.constant 0 : index
      %c0_7 = arith.constant 0 : index
      %16 = vector.load %arg5[%c0_6, %c0_7] : memref<2x512xf32, #tpu.memory_space<vmem>>, vector<2x512xf32>
      tpu.vector_store %arg5[%c0_6, %c0_7], %15 {strides = array<i32>} : memref<2x512xf32, #tpu.memory_space<vmem>>, vector<2x512xf32>,
    } else {
    }
    %c5_i32_3 = arith.constant 5 : i32
    %10 = arith.cmpi sge, %arg1, %c5_i32_3 : i32
    %c7_i32 = arith.constant 7 : i32
    %11 = arith.cmpi slt, %arg1, %c7_i32 : i32
    %12 = arith.andi %10, %11 : i1
    %13 = arith.extui %12 : i1 to i32
    %c0_i32_4 = arith.constant 0 : i32
    %14 = arith.cmpi ne, %13, %c0_i32_4 : i32
    scf.if %14 {
      %c0 = arith.constant 0 : index
      %c0_5 = arith.constant 0 : index
      %15 = vector.load %arg4[%c0, %c0_5] : memref<2x512xf32, #tpu.memory_space<vmem>>, vector<2x512xf32>
      %c0_6 = arith.constant 0 : index
      %c0_7 = arith.constant 0 : index
      %16 = vector.load %arg5[%c0_6, %c0_7] : memref<2x512xf32, #tpu.memory_space<vmem>>, vector<2x512xf32>
      tpu.vector_store %arg5[%c0_6, %c0_7], %15 {strides = array<i32>} : memref<2x512xf32, #tpu.memory_space<vmem>>, vector<2x512xf32>,
    } else {
    }
    return
  }
  func.func @transform_0(%arg0: i32, %arg1: i32) -> (i32, i32) {
    %c0_i32 = arith.constant 0 : i32
    %0 = arith.subi %arg1, %c0_i32 : i32
    %c0_i32_0 = arith.constant 0 : i32
    %1 = arith.maxsi %0, %c0_i32_0 : i32
    %c1_i32 = arith.constant 1 : i32
    %2 = arith.minsi %1, %c1_i32 : i32
    %c0_i32_1 = arith.constant 0 : i32
    return %arg0, %2 : i32, i32
  }
  func.func @transform_1(%arg0: i32, %arg1: i32) -> (i32, i32) {
    %c2_i32 = arith.constant 2 : i32
    %0 = arith.subi %arg1, %c2_i32 : i32
    %c0_i32 = arith.constant 0 : i32
    %1 = arith.maxsi %0, %c0_i32 : i32
    %c2_i32_0 = arith.constant 2 : i32
    %2 = arith.minsi %1, %c2_i32_0 : i32
    %c0_i32_1 = arith.constant 0 : i32
    return %arg0, %2 : i32, i32
  }
  func.func @transform_2(%arg0: i32, %arg1: i32) -> (i32, i32) {
    %c5_i32 = arith.constant 5 : i32
    %0 = arith.subi %arg1, %c5_i32 : i32
    %c0_i32 = arith.constant 0 : i32
    %1 = arith.maxsi %0, %c0_i32 : i32
    %c1_i32 = arith.constant 1 : i32
    %2 = arith.minsi %1, %c1_i32 : i32
    %c0_i32_0 = arith.constant 0 : i32
    return %arg0, %2 : i32, i32
  }
  func.func @transform_3(%arg0: i32, %arg1: i32) -> (i32, i32) {
    %c0_i32 = arith.constant 0 : i32
    return %arg0, %arg1 : i32, i32
  }
}

</mosaic_0001>

<bundles_post_ra>
// kernel: tpu_custom_call.1
= control target key start
LH: loop header
LB: loop body
LE: loop exit
PB: predicated region body
PF: predicated region fallthrough
CT: control target
= control target key end

     0   :  { %s1443_s0 = inlined_call_operand.hbm [shape: f32[2,1024], index: 0, kind: input, shape index: {}]   ;;  %s1444_s1 = inlined_call_operand.hbm [shape: f32[2,1536], index: 1, kind: input, shape index: {}]   ;;  %s1445_s2 = inlined_call_operand.hbm [shape: f32[2,1024], index: 2, kind: input, shape index: {}]   ;;  %s1446_s3 = inlined_call_operand.hbm [shape: f32[2,3584], index: 3, kind: output, shape index: {}]  }
   0x1   :  { %1460 = sst [smem:[#allocation20_spill]] %s1443_s0 }
   0x2   :  { %1461 = sst [smem:[#allocation21_spill]] %s1444_s1 }
   0x3   :  { %1462 = sst [smem:[#allocation22_spill]] %s1446_s3 }
   0x4   :  { %8 = vsyncpa [#allocation3], 0 }
   0x5   :  { %10 = vsyncpa [#allocation3 + $0x1], 0 }
   0x6   :  { %11 = vsyncpa [#allocation6], 0 }
   0x7   :  { %13 = vsyncpa [#allocation6 + $0x1], 0 }
   0x8   :  { %14 = vsyncpa [#allocation4], 0 }
   0x9   :  { %16 = vsyncpa [#allocation4 + $0x1], 0  ;;  %s1038_s12 = smov 0   ;;  %s1040_s13 = smov 0  }
   0xa   :  { %s1042_s14 = smov 0   ;;  %s1044_s15 = smov 0  }
   0xb   :  { %s1046_s16 = smov 0   ;;  %s1048_s17 = smov 0  }
   0xc   :  { %s1050_s18 = smov 0   ;;  %s1052_s19 = smov 0  }
   0xd   :  { %s1054_s20 = smov 0   ;;  %s1056_s21 = smov 0  }
   0xe   :  { %s1058_s22 = smov 0   ;;  %s1060_s23 = smov 0  }
   0xf   :  { %s1062_s24 = smov 0   ;;  %s1064_s25 = smov 0  }
  0x10   :  { %s1066_s26 = smov 0  }
  0x11 LB: > { %1463 = sst [smem:[#allocation13_spill]] %s956_s12  ;;  %s1114_s27 = sadd.s32 4294967295, %s1012_s26   ;;  %s1012_s26 = sphi %s1066_s26, %s22_s26   ;;  %s1008_s25 = sphi %s1064_s25, %s1517_s25   ;;  %s1004_s24 = sphi %s1062_s24, %s1516_s24   ;;  %s1000_s23 = sphi %s1060_s23, %s1515_s23   ;;  %s996_s22 = sphi %s1058_s22, %s1514_s22   ;;  %s992_s21 = sphi %s1056_s21, %s1513_s21   ;;  %s988_s20 = sphi %s1054_s20, %s1503_s20   ;;  %s984_s19 = sphi %s1052_s19, %s1512_s19   ;;  %s980_s18 = sphi %s1050_s18, %s1511_s18   ;;  %s976_s17 = sphi %s1048_s17, %s1510_s17   ;;  %s972_s16 = sphi %s1046_s16, %s1509_s16   ;;  %s968_s15 = sphi %s1044_s15, %s1508_s15   ;;  %s964_s14 = sphi %s1042_s14, %s1501_s14   ;;  %s960_s13 = sphi %s1040_s13, %s1507_s13   ;;  %s956_s12 = sphi %s1038_s12, %s1506_s12  }
  0x12   : > { %1464 = sst [smem:[#allocation14_spill]] %s964_s14  ;;  %s31_s29 = sadd.s32 1, %s1008_s25 }
  0x13   : > { %1465 = sst [smem:[#allocation15_spill]] %s988_s20  ;;  %p1453_p0 = scmp.eq.s32.totalorder %s1012_s26, 0 }
  0x14   : > { %p32_p1 = scmp.ge.s32.totalorder %s31_s29, 7  ;;  %p1452_p2 = scmp.eq.s32.totalorder %s1114_s27, 0 }
  0x15   : > { %s532_s30 = sadd.s32 4294967294, %s1008_s25  ;;  %s89_s4 = sadd.s32 1, %s988_s20 }
  0x16   : > { %s1519_s29 = smov (%p32_p1, %s31_s29), 0  ;;  %p75_p3 = scmp.gt.s32.totalorder %s532_s30, 0 }
  0x17   : > { %1466 = sst [smem:[#allocation16_spill]] %s1519_s29  ;;  %p533_p4 = scmp.lt.s32.totalorder %s532_s30, 2 }
  0x18   : > { %s538_s5 = sadd.s32 4294967294, %s1519_s29  ;;  %p96_p5 = scmp.ne.s32.totalorder %s988_s20, %s984_s19 }
  0x19   : > { %s1521_s30 = smov (!%p75_p3, %s532_s30), 0  ;;  %p80_p6 = scmp.gt.s32.totalorder %s538_s5, 0 }
  0x1a   : > { %p539_p7 = scmp.lt.s32.totalorder %s538_s5, 2  ;;  %s1523_s30 = smov (!%p533_p4, %s1521_s30), 2 }
  0x1b   : > { %s1525_s5 = smov (!%p80_p6, %s538_s5), 0  ;;  %p1129_p8 = por %p96_p5, %p1453_p0 }
  0x1c   : > { %p102_p9 = scmp.ne.s32.totalorder %s984_s19, %s980_s18  ;;  %s1527_s5 = smov (!%p539_p7, %s1525_s5), 2 }
  0x1d   : > { %s151_s8 = ssub.s32 %s1008_s25, %s1519_s29  ;;  %s85_s9 = ssub.s32 %s1523_s30, %s1527_s5 }
  0x1e   : > { %p1137_p10 = por %p102_p9, %p1452_p2  ;;  %p153_p11 = scmp.eq.s32.totalorder %s151_s8, 0 }
  0x1f   : > { %p87_p12 = scmp.eq.s32.totalorder %s85_s9, 0  ;;  %s155_s10 = sadd.s32 1, %s964_s14 }
  0x20   : > { %s1468_s7 = scalar_select %p1137_p10, 1, 0 }
  0x21   : > { %s1145_s11 = scalar_select %p153_p11, %s964_s14, %s155_s10  }
  0x22   : > { %s1148_s28 = scalar_select %p87_p12, %s988_s20, %s89_s4  }
  0x23   : > { %1469 = sst [smem:[#allocation17_spill]] %s1145_s11  ;;  %p165_p13 = scmp.ne.s32.totalorder %s964_s14, %s960_s13 }
  0x24   : > { %1470 = sst [smem:[#allocation18_spill]] %s1148_s28  ;;  %p166_p1 = scmp.eq.s32.totalorder %s1114_s27, 6 }
  0x25   : > { %p171_p3 = scmp.ne.s32.totalorder %s960_s13, %s956_s12  ;;  %s1471_s18 = sadd.s32 4294967294, %s1012_s26  }
  0x26   : > { %p172_p4 = scmp.eq.s32.totalorder %s1471_s18, 6  ;;  %p1157_p5 = por %p166_p1, %p165_p13 }
  0x27   : > { %p1451_p7 = scmp.lt.s32.totalorder %s1012_s26, 7  ;;  %s217_s4 = sand.u32 1, %s1012_s26  }
  0x28   : > { %s1472_s3 = scalar_select %p1157_p5, 1, 0 }
  0x29   : > { %p1161_p6 = por %p172_p4, %p171_p3  ;;  %s219_s8 = sand.u32 1, %s988_s20  }
  0x2a   : > { %s566_s9 = sshll.u32 %s219_s8, 3  ;;  %s611_s10 = sshll.u32 %s1523_s30, 7 }
  0x2b   : > { %s1473_s5 = scalar_select %p1161_p6, 1, 0 }
  0x2c   : > { %s1475_s1 = sld [smem:[#allocation21_spill]]  ;;  %s221_s18 = scalar_lea.vmem [#allocation5], %s566_s9 }
  0x2d   : > { %1474 = sst [smem:[#allocation19_spill]] %s1473_s5  ;;  %s236_s12 = sshll.u32 %s221_s18, 4  ;;  %s1173_s12 = int_to_ptr.vmem [resolvable:$true] %s236_s12 }
  0x2e   : > { %p1179_p9 = pnand %p1451_p7, %p1129_p8  ;;  %s1185_s28 = scalar_lea.sflag [#allocation6], %s217_s4 }
  0x30   : > { %p762_p1 = pneg %p1179_p9 }
  0x32   : > { %s1171_s14 = scalar_lea.hbm %s1475_s1, %s611_s10  ;;  %s765_s8 = scalar_lea.hbm %s1475_s1, 384 }
  0x33   : > { %s760_s30 = scalar_lea.hbm %s1171_s14, 128  ;;  %p766_p8 = scmp.lt.u32.totalorder %s1171_s14, %s1475_s1 }
  0x34   : > { %p761_p13 = scmp.ne.s32.totalorder %s1171_s14, %s760_s30  ;;  %p767_p7 = scmp.lt.u32.totalorder %s765_s8, %s760_s30 }
  0x35   : > { %p769_p0 = scmp.lt.u32.totalorder %s760_s30, %s1171_s14 }
  0x36   : > { %p763_p3 = pnand %p762_p1, %p761_p13  ;;  %p768_p2 = por %p767_p7, %p766_p8 }
  0x38   : > { %p764_p4 = pneg %p763_p3  ;;  %p770_p11 = por %p769_p0, %p768_p2 }
  0x3a   : > { %p771_p12 = pnand %p770_p11, %p764_p4 }
  0x3c   : > { %774 = shalt.err (!%p771_p12)
}
  0x3d   : > { %s775_s4 = scalar_lea.vmem %s1173_s12, 128  ;;  %s1014_s18 = smov [#allocation5]  }
  0x3e   : > { %p776_p13 = scmp.ne.s32.totalorder %s1173_s12, %s775_s4  ;;  %s780_s6 = sshll.u32 %s1014_s18, 4  ;;  %s781_s6 = int_to_ptr.vmem [resolvable:$false] %s780_s6 }
  0x3f   : > { %s782_s11 = scalar_lea.vmem %s781_s6, 256  ;;  %p783_p5 = scmp.lt.s32.totalorder %s1173_s12, %s781_s6 }
  0x40   : > { %p778_p3 = pnand %p776_p13, %p762_p1  ;;  %p784_p7 = scmp.lt.s32.totalorder %s782_s11, %s775_s4 }
  0x42   : > { %p779_p6 = pneg %p778_p3  ;;  %p785_p8 = por %p784_p7, %p783_p5 }
  0x44   : > { %p786_p0 = pnand %p785_p8, %p779_p6 }
  0x46   : > { %789 = shalt.err (!%p786_p0)
}
  0x47   : > { %630 = dma.hbm_to_vmem [thread:$0]  (!%p1179_p9), %s1171_s14, 128, %s1173_s12, %s1185_s28  }
  0x48   : > { %p1477_p2 = scmp.lt.s32.totalorder %s1012_s26, 8  ;;  %p1478_p5 = scmp.ge.s32.totalorder %s1012_s26, 1 }
  0x49   : > { %p38_p11 = scmp.gt.s32.totalorder %s1008_s25, 0  ;;  %p522_p12 = scmp.lt.s32.totalorder %s1008_s25, 1 }
  0x4a   : > { %p1217_p6 = pnand %p1478_p5, %p1477_p2  ;;  %p42_p1 = scmp.gt.s32.totalorder %s1519_s29, 0 }
  0x4b   : > { %p527_p4 = scmp.lt.s32.totalorder %s1519_s29, 1  ;;  %s51_s9 = sadd.s32 1, %s1000_s23 }
  0x4c   : > { %s39_s30 = scalar_select %p38_p11, %s1008_s25, 0 }
  0x4d   : > { %s43_s8 = scalar_select %p42_p1, %s1519_s29, 0 }
  0x4e   : > { %s1529_s30 = smov (!%p522_p12, %s39_s30), 1  ;;  %p58_p9 = scmp.ne.s32.totalorder %s1000_s23, %s996_s22 }
  0x4f   : > { %s1531_s8 = smov (!%p527_p4, %s43_s8), 1  ;;  %p64_p13 = scmp.ne.s32.totalorder %s996_s22, %s992_s21 }
  0x50   : > { %s47_s12 = ssub.s32 %s1529_s30, %s1531_s8  ;;  %p1480_p7 = scmp.eq.s32.totalorder %s1012_s26, 0 }
  0x51   : > { %p49_p3 = scmp.eq.s32.totalorder %s47_s12, 0  ;;  %p1481_p0 = scmp.eq.s32.totalorder %s1114_s27, 0 }
  0x52   : > { %p60_p8 = por %p1480_p7, %p58_p9  ;;  %s192_s10 = sand.u32 1, %s1000_s23  }
  0x53   : > { %p1236_p2 = por %p1481_p0, %p64_p13  ;;  %s558_s18 = sshll.u32 %s192_s10, 3 }
  0x54   : > { %s1242_s4 = scalar_select %p49_p3, %s1000_s23, %s51_s9  }
  0x55   : > { %s1482_s14 = scalar_select %p1236_p2, 1, 0 }
  0x56   : > { %s608_s6 = sshll.u32 %s1529_s30, 7  ;;  %s1483_s0 = sld [smem:[#allocation20_spill]] }
  0x57   : > { %s196_s21 = scalar_lea.vmem [#allocation2], %s558_s18  ;;  %p1484_p5 = scmp.lt.s32.totalorder %s1012_s26, 7 }
  0x58   : > { %s210_s8 = sshll.u32 %s196_s21, 4  ;;  %s193_s30 = scalar_lea.sflag [#allocation3], %s192_s10  ;;  %s1249_s8 = int_to_ptr.vmem [resolvable:$true] %s210_s8 }
  0x59   : > { %p1253_p11 = pnand %p1484_p5, %p60_p8 }
  0x5b   : > { %p792_p1 = pneg %p1253_p11 }
  0x5c   : > { %s1247_s20 = scalar_lea.hbm %s1483_s0, %s608_s6  ;;  %s795_s6 = scalar_lea.hbm %s1483_s0, 256 }
  0x5d   : > { %s790_s9 = scalar_lea.hbm %s1247_s20, 128  ;;  %p796_p13 = scmp.lt.u32.totalorder %s1247_s20, %s1483_s0 }
  0x5e   : > { %p791_p12 = scmp.ne.s32.totalorder %s1247_s20, %s790_s9  ;;  %p797_p3 = scmp.lt.u32.totalorder %s795_s6, %s790_s9 }
  0x5f   : > { %p799_p8 = scmp.lt.u32.totalorder %s790_s9, %s1247_s20 }
  0x60   : > { %p793_p4 = pnand %p792_p1, %p791_p12  ;;  %p798_p7 = por %p797_p3, %p796_p13 }
  0x62   : > { %p794_p9 = pneg %p793_p4  ;;  %p800_p0 = por %p799_p8, %p798_p7 }
  0x64   : > { %p801_p5 = pnand %p800_p0, %p794_p9 }
  0x66   : > { %804 = shalt.err (!%p801_p5)
}
  0x67   : > { %s805_s10 = scalar_lea.vmem %s1249_s8, 128  ;;  %s1015_s1 = smov [#allocation2]  }
  0x68   : > { %p806_p12 = scmp.ne.s32.totalorder %s1249_s8, %s805_s10  ;;  %s810_s18 = sshll.u32 %s1015_s1, 4  ;;  %s811_s18 = int_to_ptr.vmem [resolvable:$false] %s810_s18 }
  0x69   : > { %s812_s11 = scalar_lea.vmem %s811_s18, 256  ;;  %p813_p2 = scmp.lt.s32.totalorder %s1249_s8, %s811_s18 }
  0x6a   : > { %p808_p4 = pnand %p806_p12, %p792_p1  ;;  %p814_p13 = scmp.lt.s32.totalorder %s812_s11, %s805_s10 }
  0x6c   : > { %p809_p10 = pneg %p808_p4  ;;  %p815_p3 = por %p814_p13, %p813_p2 }
  0x6e   : > { %p816_p7 = pnand %p815_p3, %p809_p10 }
  0x70   : > { %819 = shalt.err (!%p816_p7)
}
  0x71   : > { %627 = dma.hbm_to_vmem [thread:$0]  (!%p1253_p11), %s1247_s20, 128, %s1249_s8, %s193_s30  }
  0x72   : > { %s544_s9 = sadd.s32 4294967291, %s1008_s25  ;;  %s550_s6 = sadd.s32 4294967291, %s1519_s29 }
  0x73   : > { %p113_p1 = scmp.gt.s32.totalorder %s544_s9, 0  ;;  %p545_p2 = scmp.lt.s32.totalorder %s544_s9, 1 }
  0x74   : > { %s127_s21 = sadd.s32 1, %s976_s17  ;;  %p118_p10 = scmp.gt.s32.totalorder %s550_s6, 0 }
  0x75   : > { %s1533_s9 = smov (!%p113_p1, %s544_s9), 0  ;;  %p551_p9 = scmp.lt.s32.totalorder %s550_s6, 1 }
  0x76   : > { %s1535_s9 = smov (!%p545_p2, %s1533_s9), 1  ;;  %s1537_s6 = smov (!%p118_p10, %s550_s6), 0 }
  0x77   : > { %p134_p8 = scmp.ne.s32.totalorder %s976_s17, %s972_s16  ;;  %p140_p0 = scmp.ne.s32.totalorder %s972_s16, %s968_s15 }
  0x78   : > { %s1539_s6 = smov (!%p551_p9, %s1537_s6), 1  ;;  %p1486_p5 = scmp.eq.s32.totalorder %s1012_s26, 0 }
  0x79   : > { %p1487_p4 = scmp.eq.s32.totalorder %s1114_s27, 0  ;;  %s123_s8 = ssub.s32 %s1535_s9, %s1539_s6 }
  0x7a   : > { %p136_p12 = por %p134_p8, %p1486_p5  ;;  %s245_s12 = sand.u32 1, %s976_s17  }
  0x7b   : > { %p1293_p11 = por %p140_p0, %p1487_p4  ;;  %p125_p13 = scmp.eq.s32.totalorder %s123_s8, 0 }
  0x7c   : > { %s575_s30 = sshll.u32 %s245_s12, 3  ;;  %s614_s10 = sshll.u32 %s1535_s9, 7 }
  0x7d   : > { %s1488_s20 = scalar_select %p1293_p11, 1, 0 }
  0x7e   : > { %s1299_s1 = scalar_select %p125_p13, %s976_s17, %s127_s21  }
  0x7f   : > { %s1304_s0 = scalar_lea.hbm %s1445_s2, %s614_s10  ;;  %s247_s15 = scalar_lea.vmem [#allocation7], %s575_s30 }
  0x80   : > { %s262_s29 = sshll.u32 %s247_s15, 4  ;;  %p1489_p3 = scmp.lt.s32.totalorder %s1012_s26, 7  ;;  %s1306_s29 = int_to_ptr.vmem [resolvable:$true] %s262_s29 }
  0x81   : > { %s820_s9 = scalar_lea.hbm %s1304_s0, 128  ;;  %s825_s12 = scalar_lea.hbm %s1445_s2, 256 }
  0x82   : > { %p1310_p7 = pnand %p1489_p3, %p136_p12  ;;  %p821_p1 = scmp.ne.s32.totalorder %s1304_s0, %s820_s9 }
  0x83   : > { %p826_p8 = scmp.lt.u32.totalorder %s1304_s0, %s1445_s2  ;;  %p827_p0 = scmp.lt.u32.totalorder %s825_s12, %s820_s9 }
  0x84   : > { %p822_p2 = pneg %p1310_p7  ;;  %p829_p12 = scmp.lt.u32.totalorder %s820_s9, %s1304_s0 }
  0x85   : > { %p828_p5 = por %p827_p0, %p826_p8 }
  0x86   : > { %p823_p10 = pnand %p822_p2, %p821_p1 }
  0x87   : > { %p830_p4 = por %p829_p12, %p828_p5 }
  0x88   : > { %p824_p9 = pneg %p823_p10 }
  0x8a   : > { %p831_p13 = pnand %p830_p4, %p824_p9 }
  0x8c   : > { %834 = shalt.err (!%p831_p13)
}
  0x8d   : > { %s835_s18 = scalar_lea.vmem %s1306_s29, 128  ;;  %s1016_s11 = smov [#allocation7]  }
  0x8e   : > { %p836_p3 = scmp.ne.s32.totalorder %s1306_s29, %s835_s18  ;;  %s840_s15 = sshll.u32 %s1016_s11, 4  ;;  %s841_s15 = int_to_ptr.vmem [resolvable:$false] %s840_s15 }
  0x8f   : > { %s842_s21 = scalar_lea.vmem %s841_s15, 256  ;;  %p843_p11 = scmp.lt.s32.totalorder %s1306_s29, %s841_s15 }
  0x90   : > { %p838_p1 = pnand %p836_p3, %p822_p2  ;;  %p844_p8 = scmp.lt.s32.totalorder %s842_s21, %s835_s18 }
  0x92   : > { %p839_p10 = pneg %p838_p1  ;;  %p845_p0 = por %p844_p8, %p843_p11 }
  0x94   : > { %p846_p5 = pnand %p845_p0, %p839_p10 }
  0x96   : > { %849 = shalt.err (!%p846_p5)
}
  0x97   : > { %633 = dma.hbm_to_vmem [thread:$0]  (!%p1310_p7), %s1304_s0, 128, %s1306_s29, %s1185_s28  }
  0x98   : > { %271 = sbr.rel (%p1217_p6) target bundleno = 229 (0xe5), region = 32  ;;  %s273_s9 = sand.u32 (!%p1217_p6), 1, %s996_s22  }
  0x99   : > { %s585_s8 = sshll.u32 (!%p1217_p6), %s273_s9, 3  ;;  %s274_s12 = scalar_lea.sflag (!%p1217_p6), [#allocation3], %s273_s9 }
  0x9a   : > { %s277_s30 = scalar_lea.vmem (!%p1217_p6), [#allocation2], %s585_s8  ;;  %p1491_p2 = scmp.ne.s32.totalorder (!%p1217_p6), %s1482_s14, 0 }
  0x9f   : > { %939 = dma.done.wait (%p1491_p2), %s274_s12, 128  }
  0xa0   : > { %941 = vsyncadd (%p1491_p2), %s274_s12, 4294967168  ;;  %s282_s6 = sand.u32 1, %s1114_s27   ;;  %s284_s10 = sand.u32 1, %s984_s19  }
  0xa1   : > { %s586_s0 = sshll.u32 %s284_s10, 3  ;;  %s283_s29 = scalar_lea.sflag [#allocation6], %s282_s6 }
  0xa2   : > { %s286_s28 = scalar_lea.vmem [#allocation5], %s586_s0  ;;  %p1492_p6 = scmp.ne.s32.totalorder %s1468_s7, 0 }
  0xa4   : > { %943 = dma.done.wait (%p1492_p6), %s283_s29, 128  }
  0xa5   : > { %945 = vsyncadd (%p1492_p6), %s283_s29, 4294967168  ;;  %s293_s5 = sand.u32 1, %s972_s16   ;;  %p1493_p11 = scmp.ne.s32.totalorder %s1488_s20, 0 }
  0xa6   : > { %s587_s18 = sshll.u32 %s293_s5, 3 }
  0xa7   : > { %s295_s11 = scalar_lea.vmem [#allocation7], %s587_s18 }
  0xa8   : > { %947 = dma.done.wait (%p1493_p11), %s283_s29, 128  }
  0xa9   : > { %949 = vsyncadd (%p1493_p11), %s283_s29, 4294967168  ;;  %s325_s27 = sand.u32 1, %s960_s13   ;;  %p346_p7 = scmp.ge.s32.totalorder %s1004_s24, 0 }
  0xaa   : > { %s588_s14 = sshll.u32 %s325_s27, 3  ;;  %p347_p9 = scmp.lt.s32.totalorder %s1004_s24, 2 }
  0xab   : > { %s327_s7 = scalar_lea.vmem [#allocation8], %s588_s14 }
  0xac   : > { %p348_p12 = pnand %p347_p9, %p346_p7 }
  0xad   : > { %v352_v0 = vld [vmem:[%s277_s30] sm:$0xff] (!%p348_p12) }
  0xae   : > { %351 = sbr.rel (%p348_p12) target bundleno = 181 (0xb5), region = 48  ;;  %353 = vst [vmem:[%s327_s7] sm:$0xff] (!%p348_p12), %v352_v0 }
  0xb5 PF: > { %p354_p4 = scmp.ge.s32.totalorder %s1004_s24, 2  ;;  %p355_p13 = scmp.lt.s32.totalorder %s1004_s24, 5 }
  0xb7   : > { %p356_p3 = pnand %p355_p13, %p354_p4 }
  0xb8   : > { %v360_v1 = vld [vmem:[%s286_s28] sm:$0xff] (!%p356_p3) }
  0xb9   : > { %359 = sbr.rel (%p356_p3) target bundleno = 192 (0xc0), region = 52  ;;  %361 = vst [vmem:[%s327_s7] sm:$0xff] (!%p356_p3), %v360_v1 }
  0xc0 PF: > { %p362_p1 = scmp.ge.s32.totalorder %s1004_s24, 5  ;;  %p363_p10 = scmp.lt.s32.totalorder %s1004_s24, 7 }
  0xc2   : > { %p364_p8 = pnand %p363_p10, %p362_p1 }
  0xc3   : > { %v368_v2 = vld [vmem:[%s295_s11] sm:$0xff] (!%p364_p8) }
  0xc4   : > { %367 = sbr.rel (%p364_p8) target bundleno = 203 (0xcb), region = 56  ;;  %369 = vst [vmem:[%s327_s7] sm:$0xff] (!%p364_p8), %v368_v2 }
  0xcb PF: > { %s615_s20 = sshll.u32 %s1004_s24, 7  ;;  %s1494_s9 = sld [smem:[#allocation22_spill]] }
  0xcc   : > { %s387_s12 = sshll.u32 %s327_s7, 4  ;;  %s371_s30 = scalar_lea.sflag [#allocation4], %s325_s27  ;;  %s388_s12 = int_to_ptr.vmem [resolvable:$true] %s387_s12 }
  0xcd   : > { %s850_s6 = scalar_lea.vmem %s388_s12, 128  ;;  %p1495_p5 = scmp.ne.s32.totalorder %s1472_s3, 0 }
  0xce   : > { %p851_p0 = scmp.ne.s32.totalorder %s388_s12, %s850_s6  ;;  %s1017_s10 = smov [#allocation8]  }
  0xcf   : > { %s854_s0 = sshll.u32 %s1017_s10, 4  ;;  %s855_s0 = int_to_ptr.vmem [resolvable:$false] %s854_s0 }
  0xd0   : > { %p852_p2 = pnand %p851_p0, %p1495_p5  ;;  %s856_s29 = scalar_lea.vmem %s855_s0, 256 }
  0xd1   : > { %s1369_s8 = scalar_lea.hbm %s1494_s9, %s615_s20  ;;  %p857_p11 = scmp.lt.s32.totalorder %s388_s12, %s855_s0 }
  0xd2   : > { %p853_p6 = pneg %p852_p2  ;;  %p858_p7 = scmp.lt.s32.totalorder %s856_s29, %s850_s6 }
  0xd4   : > { %p859_p9 = por %p858_p7, %p857_p11 }
  0xd6   : > { %p860_p12 = pnand %p859_p9, %p853_p6 }
  0xd8   : > { %863 = shalt.err (!%p860_p12)
}
  0xd9   : > { %s864_s24 = scalar_lea.hbm %s1369_s8, 128  ;;  %s868_s18 = scalar_lea.hbm %s1494_s9, 896 }
  0xda   : > { %p865_p4 = scmp.ne.s32.totalorder %s1369_s8, %s864_s24  ;;  %p869_p1 = scmp.lt.u32.totalorder %s1369_s8, %s1494_s9 }
  0xdb   : > { %p870_p10 = scmp.lt.u32.totalorder %s868_s18, %s864_s24  ;;  %p872_p0 = scmp.lt.u32.totalorder %s864_s24, %s1369_s8 }
  0xdc   : > { %p866_p13 = pnand %p865_p4, %p1495_p5 }
  0xdd   : > { %p871_p8 = por %p870_p10, %p869_p1 }
  0xde   : > { %p867_p3 = pneg %p866_p13 }
  0xdf   : > { %p873_p2 = por %p872_p0, %p871_p8 }
  0xe1   : > { %p874_p6 = pnand %p873_p2, %p867_p3 }
  0xe3   : > { %877 = shalt.err (!%p874_p6)
}
  0xe4   : > { %622 = dma.vmem_to_hbm [thread:$0]  (%p1495_p5), %s388_s12, 128, %s1369_s8, %s371_s30  }
  0xe5 PF: > { %s1496_s14 = sld [smem:[#allocation13_spill]]  ;;  %s1497_s7 = sld [smem:[#allocation19_spill]] }
  0xe6   : > { %p639_p11 = scmp.ge.s32.totalorder %s1012_s26, 2 }
  0xeb   : > { %s399_s20 = sand.u32 1, %s1496_s14   ;;  %p1498_p7 = scmp.ne.s32.totalorder %s1497_s7, 0 }
  0xec   : > { %s400_s15 = scalar_lea.sflag [#allocation4], %s399_s20 }
  0xed   : > { %p635_p9 = pnand %p639_p11, %p1498_p7 }
  0xef   : > { %951 = dma.done.wait (!%p635_p9), %s400_s15, 128  }
  0xf0   : > { %953 = vsyncadd (!%p635_p9), %s400_s15, 4294967168  ;;  %s22_s26 = sadd.s32 1, %s1012_s26   ;;  %s1500_s3 = sld [smem:[#allocation14_spill]] }
  0xf1   : > { %p1393_p12 = scmp.ge.s32.totalorder %s22_s26, 9   ;;  %s1501_s14 = sld [smem:[#allocation17_spill]] }
  0xf2   : > { %s1502_s8 = sld [smem:[#allocation15_spill]]  ;;  %s1503_s20 = sld [smem:[#allocation18_spill]] }
  0xf3   : > { %s1504_s30 = sld [smem:[#allocation16_spill]]  ;;  %s1506_s12 = smov %s960_s13 }
  0xf4   : > { %s1508_s15 = smov %s972_s16  ;;  %s1509_s16 = smov %s976_s17 }
  0xf5   : > { %s1510_s17 = smov %s1299_s1  ;;  %s1511_s18 = smov %s984_s19 }
  0xf6   : > { %s1507_s13 = smov %s1500_s3  ;;  %s1513_s21 = smov %s996_s22 }
  0xf7   : > { %s1514_s22 = smov %s1000_s23  ;;  %s1515_s23 = smov %s1242_s4 }
  0xf8   : > { %s1512_s19 = smov %s1502_s8  ;;  %s1516_s24 = smov %s1008_s25 }
  0xf9   : > { %s1517_s25 = smov %s1504_s30  ;;  %21 = sbr.rel (!%p1393_p12) target bundleno = 17 (0x11), region = 113 }
 0x100   :  { %405 = vsyncpa [#allocation3], 1 }
 0x101   :  { %407 = vsyncpa [#allocation3 + $0x1], 1 }
 0x102   :  { %408 = vsyncpa [#allocation6], 1 }
 0x103   :  { %410 = vsyncpa [#allocation6 + $0x1], 1 }
 0x104   :  { %411 = vsyncpa [#allocation4], 1 }
 0x105   :  { %413 = vsyncpa [#allocation4 + $0x1], 1 }

</bundles_post_ra>
